<compile_context>
chip_gen: v7x
topology: tpu7x:2x2x1
jax: 0.10.0
libtpu: 0.0.40
codegen_flags: <defaults>
</compile_context>

<pallas_src>
import functools

import jax
import jax.numpy as jnp
from jax import lax
from jax.experimental import pallas as pl
from jax.experimental.pallas import tpu as pltpu

_CHUNK = 8  # rows coalesced per output store (sublane granularity)
_GATE_ORDER = (0, 1, 3, 2)  # PyTorch (i, f, g, o) -> kernel lane layout (i, f, o, g)


# ----------------------------------------------------------------------------
# One-time weight prep kernel: (V, 4H) input-projection table = embed @ Wx + b
# ----------------------------------------------------------------------------
def _input_table_kernel(emb_ref, wx_ref, b_ref, o_ref):
    o_ref[...] = jnp.dot(emb_ref[...], wx_ref[...],
                         preferred_element_type=jnp.float32) + b_ref[...]


def precompute_input_table(embed, wx_fused, b_fused):
    V = embed.shape[0]
    H4 = wx_fused.shape[1]
    vmem = pl.BlockSpec(memory_space=pltpu.MemorySpace.VMEM)
    return pl.pallas_call(
        _input_table_kernel,
        out_shape=jax.ShapeDtypeStruct((V, H4), jnp.float32),
        in_specs=[vmem, vmem, vmem],
        out_specs=vmem,
    )(embed, wx_fused, b_fused)


# ----------------------------------------------------------------------------
# Fused kernel: token gather -> LSTM recurrence -> Linear -> LogSoftmax
# ----------------------------------------------------------------------------
def _fused_lstm_kernel(tokens_ref, xwt_ref, wh_ref, h0_ref, c0_ref,
                       wlin_ref, blin_ref,
                       out_ref, hn_ref, cn_ref,
                       hbuf_ref, *, chunk):
    T = tokens_ref.shape[0]
    H = wh_ref.shape[0]
    wh = wh_ref[...]  # (H, 4H), gate order (i, f, o, g)

    def cell(h, c, t):
        tok = tokens_ref[t]                                   # scalar from SMEM
        pre = xwt_ref[pl.ds(tok, 1), :] + jnp.dot(            # (1, 4H): one MXU matmul
            h, wh, preferred_element_type=jnp.float32)
        s = jax.nn.sigmoid(pre[:, :3 * H])                    # i|f|o in one shot
        i_g = s[:, :H]
        f_g = s[:, H:2 * H]
        o_g = s[:, 2 * H:3 * H]
        g_g = jnp.tanh(pre[:, 3 * H:])
        c_new = f_g * c + i_g * g_g
        h_new = o_g * jnp.tanh(c_new)
        return h_new, c_new

    h = h0_ref[...]
    c = c0_ref[...]

    n_full = T // chunk

    def chunk_body(k, carry):
        h, c = carry
        base = pl.multiple_of(k * chunk, chunk)
        rows = []
        for j in range(chunk):                                 # static unroll by 8
            h, c = cell(h, c, base + j)
            rows.append(h)
        hbuf_ref[pl.ds(base, chunk), :] = jnp.concatenate(rows, axis=0)
        return (h, c)

    if n_full > 0:
        h, c = lax.fori_loop(0, n_full, chunk_body, (h, c))

    # statically-unrolled tail (T % chunk rows; the only masked 1-row stores)
    for t in range(n_full * chunk, T):
        h, c = cell(h, c, t)
        hbuf_ref[pl.ds(t, 1), :] = h

    hn_ref[...] = h
    cn_ref[...] = c

    # Linear head + LogSoftmax(dim=1) on the VMEM-resident hidden states.
    # TODO(synk): for large T / vocab, tile this over (T, V) with a parallel grid
    # so the head pipelines, shards across v7x's 2 TCs and fits 64 MiB VMEM.
    logits = jnp.dot(hbuf_ref[...], wlin_ref[...],
                     preferred_element_type=jnp.float32) + blin_ref[...]
    m = jnp.max(logits, axis=-1, keepdims=True)
    z = logits - m
    lse = jnp.log(jnp.sum(jnp.exp(z), axis=-1, keepdims=True))
    out_ref[...] = z - lse


def fused_lstm_forward(tokens, xw_table, wh, h0, c0, w_lin, b_lin):
    T = tokens.shape[0]
    H = wh.shape[0]
    V = w_lin.shape[1]
    vmem = pl.BlockSpec(memory_space=pltpu.MemorySpace.VMEM)
    smem = pl.BlockSpec(memory_space=pltpu.MemorySpace.SMEM)
    return pl.pallas_call(
        functools.partial(_fused_lstm_kernel, chunk=_CHUNK),
        out_shape=(
            jax.ShapeDtypeStruct((T, V), jnp.float32),   # log-probs
            jax.ShapeDtypeStruct((1, H), jnp.float32),   # h_n
            jax.ShapeDtypeStruct((1, H), jnp.float32),   # c_n
        ),
        in_specs=[smem, vmem, vmem, vmem, vmem, vmem, vmem],
        out_specs=(vmem, vmem, vmem),
        scratch_shapes=[pltpu.VMEM((T, H), jnp.float32)],
    )(tokens, xw_table, wh, h0, c0, w_lin, b_lin)


# ----------------------------------------------------------------------------
# Parameter prep (amortized across calls, like PyTorch's stored weights)
# ----------------------------------------------------------------------------
def prepare_params(raw):
    wx_f = jnp.concatenate([raw["w_ih"][g] for g in _GATE_ORDER], axis=-1)  # (E, 4H)
    wh_f = jnp.concatenate([raw["w_hh"][g] for g in _GATE_ORDER], axis=-1)  # (H, 4H)
    b_f = jnp.concatenate([raw["b"][g] for g in _GATE_ORDER], axis=-1)      # (1, 4H)
    # TODO(synk): on v6e/v7x, cast wh_f / w_lin (and matmul activations) to
    # bfloat16 with f32 accumulation for MXU throughput; kept f32 here to
    # preserve tight numerical parity with the reference.
    xw_table = precompute_input_table(raw["embed"], wx_f, b_f)              # (V, 4H)
    return {"xw_table": xw_table, "wh": wh_f,
            "w_lin": raw["w_lin"], "b_lin": raw["b_lin"]}


# ----------------------------------------------------------------------------
# Full module forward
# ----------------------------------------------------------------------------
@jax.jit
def lstm_module_forward(tokens, prepared, hidden):
    h0, c0 = hidden                                  # each (1, 1, H)
    H = prepared["wh"].shape[0]
    out, h_n, c_n = fused_lstm_forward(
        tokens, prepared["xw_table"], prepared["wh"],
        h0.reshape(1, H), c0.reshape(1, H),
        prepared["w_lin"], prepared["b_lin"])
    # TODO(synk): nn.Dropout(0.1) is stochastic only in train mode; modeled as
    # eval-mode identity.
    return out, (h_n.reshape(1, 1, H), c_n.reshape(1, 1, H))


# ----------------------------------------------------------------------------
# Pure-JAX reference (correctness check only; PyTorch gate order i, f, g, o)
# ----------------------------------------------------------------------------
def reference_forward(tokens, raw, hidden):
    x = raw["embed"][tokens]
    h = hidden[0].reshape(1, -1)
    c = hidden[1].reshape(1, -1)
    outs = []
    for t in range(tokens.shape[0]):
        xt = x[t:t + 1]
        pre = [xt @ raw["w_ih"][g] + h @ raw["w_hh"][g] + raw["b"][g]
               for g in range(4)]
        i = jax.nn.sigmoid(pre[0])
        f = jax.nn.sigmoid(pre[1])
        g_ = jnp.tanh(pre[2])
        o = jax.nn.sigmoid(pre[3])
        c = f * c + i * g_
        h = o * jnp.tanh(c)
        outs.append(h)
    lstm_out = jnp.concatenate(outs, axis=0)
    logits = lstm_out @ raw["w_lin"] + raw["b_lin"]
    out = jax.nn.log_softmax(logits, axis=1)
    H = h.shape[-1]
    return out, (h.reshape(1, 1, H), c.reshape(1, 1, H))


# ----------------------------------------------------------------------------
# Deterministic parameter init + demo run
# ----------------------------------------------------------------------------
def make_params(key, input_dim, embed_dim, hidden_dim):
    ks = jax.random.split(key, 6)
    s = 0.1
    return {
        "embed": jax.random.normal(ks[0], (input_dim, embed_dim), jnp.float32) * s,
        # per-gate stacked weights, PyTorch gate order (i, f, g, o), stored
        # transposed so the math is x @ w_ih[g] and h @ w_hh[g]
        "w_ih": jax.random.normal(ks[1], (4, embed_dim, hidden_dim), jnp.float32) * s,
        "w_hh": jax.random.normal(ks[2], (4, hidden_dim, hidden_dim), jnp.float32) * s,
        # combined b_ih + b_hh per gate
        "b": jax.random.normal(ks[3], (4, 1, hidden_dim), jnp.float32) * s,
        "w_lin": jax.random.normal(ks[4], (hidden_dim, input_dim), jnp.float32) * s,
        "b_lin": jax.random.normal(ks[5], (1, input_dim), jnp.float32) * s,
    }


if __name__ == "__main__":
    input_dim, embed_dim, hidden_dim = 16, 8, 32
    seq_len = 12  # exercises both the 8-step chunked loop and the tail path

    key = jax.random.PRNGKey(0)
    k_tok, k_par = jax.random.split(key)

    tokens = jax.random.randint(k_tok, (seq_len,), 0, input_dim, dtype=jnp.int32)
    raw_params = make_params(k_par, input_dim, embed_dim, hidden_dim)
    prepared = prepare_params(raw_params)
    hidden0 = (jnp.zeros((1, 1, hidden_dim), jnp.float32),
               jnp.zeros((1, 1, hidden_dim), jnp.float32))

    out, (h_n, c_n) = lstm_module_forward(tokens, prepared, hidden0)
    jax.block_until_ready((out, h_n, c_n))

    ref_out, (ref_h, ref_c) = reference_forward(tokens, raw_params, hidden0)

    assert out.shape == (seq_len, input_dim)
    assert h_n.shape == (1, 1, hidden_dim) and c_n.shape == (1, 1, hidden_dim)
    assert jnp.allclose(out, ref_out, rtol=1e-3, atol=1e-3)
    assert jnp.allclose(h_n, ref_h, rtol=1e-3, atol=1e-3)
    assert jnp.allclose(c_n, ref_c, rtol=1e-3, atol=1e-3)

    print("KERNEL_OK")
</pallas_src>

<mosaic_0001>
module attributes {stable_mosaic.version = 11 : i64} {
  func.func @_input_table_kernel(%arg0: memref<16x8xf32, #tpu.memory_space<vmem>>, %arg1: memref<8x128xf32, #tpu.memory_space<vmem>>, %arg2: memref<1x128xf32, #tpu.memory_space<vmem>>, %arg3: memref<16x128xf32, #tpu.memory_space<vmem>>) attributes {dimension_semantics = [], scalar_prefetch = 0 : i64, scratch_operands = 0 : i64, tpu.core_type = #tpu.core_type<tc>} {
    %c0 = arith.constant 0 : index
    %c0_0 = arith.constant 0 : index
    %0 = vector.load %arg0[%c0, %c0_0] : memref<16x8xf32, #tpu.memory_space<vmem>>, vector<16x8xf32>
    %c0_1 = arith.constant 0 : index
    %c0_2 = arith.constant 0 : index
    %1 = vector.load %arg1[%c0_1, %c0_2] : memref<8x128xf32, #tpu.memory_space<vmem>>, vector<8x128xf32>
    %cst = arith.constant dense<0.000000e+00> : vector<16x128xf32>
    %2 = tpu.matmul %0, %1, %cst {dimension_numbers = #tpu.dot_dimension_numbers<[1], [0], [0], [1], [0, 0, 1, 1], [], []>} : vector<16x8xf32>, vector<8x128xf32>, vector<16x128xf32> -> vector<16x128xf32>
    %c0_3 = arith.constant 0 : index
    %c0_4 = arith.constant 0 : index
    %3 = vector.load %arg2[%c0_3, %c0_4] : memref<1x128xf32, #tpu.memory_space<vmem>>, vector<1x128xf32>
    %4 = vector.broadcast %3 : vector<1x128xf32> to vector<16x128xf32>
    %5 = arith.addf %2, %4 : vector<16x128xf32>
    %c0_5 = arith.constant 0 : index
    %c0_6 = arith.constant 0 : index
    %6 = vector.load %arg3[%c0_5, %c0_6] : memref<16x128xf32, #tpu.memory_space<vmem>>, vector<16x128xf32>
    tpu.vector_store %arg3[%c0_5, %c0_6], %5 {strides = array<i32>} : memref<16x128xf32, #tpu.memory_space<vmem>>, vector<16x128xf32>,
    return
  }
}

</mosaic_0001>

<bundles_post_ra>
// kernel: tpu_custom_call.1
= control target key start
LH: loop header
LB: loop body
LE: loop exit
PB: predicated region body
PF: predicated region fallthrough
CT: control target
= control target key end

     0   :  { %vm25_vm0 = vcmask 64512   ;;  %s210_s0 = inlined_call_operand.vmem [shape: f32[16,8], index: 0, kind: input, shape index: {}]   ;;  %s211_s1 = inlined_call_operand.vmem [shape: f32[8,128], index: 1, kind: input, shape index: {}]   ;;  %s212_s2 = inlined_call_operand.vmem [shape: f32[1,128], index: 2, kind: input, shape index: {}]   ;;  %s213_s3 = inlined_call_operand.hbm [shape: f32[16,128], index: 3, kind: output, shape index: {}]  }
   0x1   :  { %v17_v0 = vld [vmem:[%s211_s1] sm:$0xff]  ;;  %v16_v2 = vld [vmem:[%s210_s0 + $0x8] sm:$0xff] }
   0x2   :  { %v15_v1 = vld [vmem:[%s210_s0] sm:$0xff]  ;;  %131 = vmatprep.subr.mxu0 %v17_v0 }
   0x3   :  { %133 = vmatprep.mubr.msk.f32.mxu0 %vm25_vm0, %v15_v1 }
   0x4   :  { %8 = vsyncpa [#allocation3], 0  ;;  %132 = vmatpush3.msra.mxu0 %v17_v0  ;;  %v125_v3 = vld [vmem:[%s212_s2] ss:$0 sm:$0xff]  ;;  %s163_s20 = smov [#allocation2]  }
   0x5   :  { %134 = vmatmul.mubr.msk.f32.vlgmr.msra.gmra.mrb[0].mxu0 %vm25_vm0, %v16_v2  ;;  %s114_s1 = sshll.u32 %s163_s20, 4  ;;  %s115_s1 = int_to_ptr.vmem [resolvable:$true] %s114_s1 }
   0x6   :  { %s139_s21 = scalar_lea.vmem %s115_s1, 256  ;;  %p144_p1 = scmp.lt.s32.totalorder %s115_s1, %s115_s1 }
   0x7   :  { %p140_p0 = scmp.ne.s32.totalorder %s115_s1, %s139_s21  ;;  %p145_p2 = scmp.lt.s32.totalorder %s139_s21, %s139_s21 }
   0x9   :  { %p146_p3 = por %p145_p2, %p144_p1 }
   0xb   :  { %p147_p4 = pnand %p146_p3, %p140_p0 }
  0xd8   :  { %v135_v4 = vpop.f32.mrb[0].mxu0 }
  0xd9   :  { %v104_v5 = vadd.f32 %v135_v4, %v125_v3  ;;  %v98_v6 = vpop.f32.mrb[1].mxu0 }
  0xda   :  { %v99_v7 = vadd.f32 %v125_v3, %v98_v6 }
  0xdb   :  { %108 = vst [vmem:[#allocation2 + $0x8] sm:$0xff] %v104_v5 }
  0xdc   :  { %107 = vst [vmem:[#allocation2] sm:$0xff] %v99_v7 }
  0xdd   :  { %150 = shalt.err (!%p147_p4)
}
  0xde   :  { %s151_s2 = scalar_lea.hbm %s213_s3, 256 }
  0xdf   :  { %p152_p5 = scmp.ne.s32.totalorder %s213_s3, %s151_s2  ;;  %p155_p6 = scmp.lt.u32.totalorder %s151_s2, %s213_s3 }
  0xe1   :  { %p157_p7 = pnand %p155_p6, %p152_p5 }
  0xe3   :  { %160 = shalt.err (!%p157_p7)
}
  0xe4   :  { %s164_s27 = smov 128   ;;  %s165_s28 = smov 8  }
  0xe5   :  { %120 = dma.vmem_to_hbm [thread:$0]  %s115_s1, 256, %s213_s3, [#allocation3], %s164_s27, %s164_s27, %s165_s28  }
  0xe6   :  { %161 = dma.done.wait [#allocation3], 256  }
  0xe7   :  { %162 = vsyncadd [#allocation3], 4294967040 }
  0xe8   :  { %124 = vsyncpa [#allocation3], 1 }

</bundles_post_ra>
